<compile_context>
chip_gen: v5e
topology: v5e:2x2
jax: 0.10.0
libtpu: 0.0.40
codegen_flags: <defaults>
</compile_context>

<pallas_src>
import jax
import jax.numpy as jnp
from jax.experimental import pallas as pl
from jax.experimental.pallas import tpu as pltpu


def linear_kernel(x_ref, w_ref, b_ref, o_ref):
    # x_ref: (K, TB) f32 in VMEM (batch on lanes)
    # w_ref: (K,)  f32 in SMEM   (scalar weights)
    # b_ref: (1,)  f32 in SMEM   (scalar bias)
    # o_ref: (1, TB) f32 in VMEM (lane-dense output)
    x = x_ref[...]                                   # (K, TB)
    acc = x[0:1, :] * w_ref[0]                       # (1, TB) f32, VPU
    for k in range(1, x.shape[0]):                   # unrolled K=6 FMA chain
        acc = acc + x[k:k + 1, :] * w_ref[k]
    o_ref[...] = (acc + b_ref[0]).astype(o_ref.dtype)


def linear_forward(x, weight, bias, *, tb=2048):
    """Equivalent of PyTorch nn.Linear: x @ weight.T + bias.

    x: (B, K) f32, weight: (N, K) f32 with N == 1, bias: (N,) f32.
    Returns (B, N) f32.
    """
    B, K = x.shape
    N = weight.shape[0]
    assert N == 1, "kernel is specialized for out_features == 1"

    # Batch tile width: multiple of 128 (lane width), capped at `tb`.
    b_rounded = ((B + 127) // 128) * 128
    tb = min(tb, b_rounded)
    B_pad = ((B + tb - 1) // tb) * tb

    # Lane-dense transposed input, zero-padded along batch.
    x_t = jnp.zeros((K, B_pad), x.dtype).at[:, :B].set(x.T)
    w = weight.reshape(K)          # (K,) scalars -> SMEM
    b = bias.reshape(1)            # (1,) scalar  -> SMEM

    out_t = pl.pallas_call(
        linear_kernel,
        out_shape=jax.ShapeDtypeStruct((N, B_pad), x.dtype),
        grid=(B_pad // tb,),
        in_specs=[
            pl.BlockSpec((K, tb), lambda i: (0, i)),                    # x tile
            pl.BlockSpec(memory_space=pltpu.MemorySpace.SMEM),          # weights
            pl.BlockSpec(memory_space=pltpu.MemorySpace.SMEM),          # bias
        ],
        out_specs=pl.BlockSpec((N, tb), lambda i: (0, i)),
        compiler_params=pltpu.CompilerParams(
            dimension_semantics=("parallel",),
        ),
        cost_estimate=pl.CostEstimate(
            flops=2 * B_pad * K,
            transcendentals=0,
            bytes_accessed=B_pad * K * 4 + B_pad * 4,
        ),
    )(x_t, w, b)

    return out_t[:, :B].T          # (B, N)


if __name__ == "__main__":
    key = jax.random.PRNGKey(0)
    kx, kw, kb = jax.random.split(key, 3)

    B, IN_F, OUT_F = 8, 6, 1

    # Deterministic parameter init (mimics nn.Linear's uniform(-1/sqrt(in), 1/sqrt(in)))
    bound = 1.0 / jnp.sqrt(jnp.float32(IN_F))
    weight = jax.random.uniform(kw, (OUT_F, IN_F), jnp.float32, -bound, bound)
    bias = jax.random.uniform(kb, (OUT_F,), jnp.float32, -bound, bound)

    x = jax.random.normal(kx, (B, IN_F), jnp.float32)

    out = linear_forward(x, weight, bias)
    out = jax.block_until_ready(out)

    # Reference check against plain JAX (same math as PyTorch's Linear).
    ref = x @ weight.T + bias
    assert out.shape == (B, OUT_F)
    assert jnp.allclose(out, ref, atol=1e-5, rtol=1e-5)

    print("KERNEL_OK")
</pallas_src>

<mosaic_0001>
module attributes {stable_mosaic.version = 11 : i64} {
  func.func @linear_kernel(%arg0: i32, %arg1: memref<6x128xf32, #tpu.memory_space<vmem>>, %arg2: memref<6xf32, #tpu.memory_space<smem>>, %arg3: memref<1xf32, #tpu.memory_space<smem>>, %arg4: memref<1x128xf32, #tpu.memory_space<vmem>>) attributes {dimension_semantics = [#tpu.dimension_semantics<parallel>], iteration_bounds = array<i64: 1>, scalar_prefetch = 0 : i64, scratch_operands = 0 : i64, tpu.core_type = #tpu.core_type<tc>, window_params = [{transform_indices = @transform_0, window_bounds = array<i64: 6, 128>}, {transform_indices = @transform_1, window_bounds = array<i64: 6>}, {transform_indices = @transform_2, window_bounds = array<i64: 1>}, {transform_indices = @transform_3, window_bounds = array<i64: 1, 128>}]} {
    %c0 = arith.constant 0 : index
    %c0_0 = arith.constant 0 : index
    %0 = vector.load %arg1[%c0, %c0_0] : memref<6x128xf32, #tpu.memory_space<vmem>>, vector<6x128xf32>
    %1 = vector.extract_strided_slice %0 {offsets = [0, 0], sizes = [1, 128], strides = [1, 1]} : vector<6x128xf32> to vector<1x128xf32>
    %c0_1 = arith.constant 0 : index
    %2 = memref.load %arg2[%c0_1] : memref<6xf32, #tpu.memory_space<smem>>
    %3 = vector.broadcast %2 : f32 to vector<1x128xf32>
    %4 = arith.mulf %1, %3 : vector<1x128xf32>
    %5 = vector.extract_strided_slice %0 {offsets = [1, 0], sizes = [1, 128], strides = [1, 1]} : vector<6x128xf32> to vector<1x128xf32>
    %c1 = arith.constant 1 : index
    %6 = memref.load %arg2[%c1] : memref<6xf32, #tpu.memory_space<smem>>
    %7 = vector.broadcast %6 : f32 to vector<1x128xf32>
    %8 = arith.mulf %5, %7 : vector<1x128xf32>
    %9 = arith.addf %4, %8 : vector<1x128xf32>
    %10 = vector.extract_strided_slice %0 {offsets = [2, 0], sizes = [1, 128], strides = [1, 1]} : vector<6x128xf32> to vector<1x128xf32>
    %c2 = arith.constant 2 : index
    %11 = memref.load %arg2[%c2] : memref<6xf32, #tpu.memory_space<smem>>
    %12 = vector.broadcast %11 : f32 to vector<1x128xf32>
    %13 = arith.mulf %10, %12 : vector<1x128xf32>
    %14 = arith.addf %9, %13 : vector<1x128xf32>
    %15 = vector.extract_strided_slice %0 {offsets = [3, 0], sizes = [1, 128], strides = [1, 1]} : vector<6x128xf32> to vector<1x128xf32>
    %c3 = arith.constant 3 : index
    %16 = memref.load %arg2[%c3] : memref<6xf32, #tpu.memory_space<smem>>
    %17 = vector.broadcast %16 : f32 to vector<1x128xf32>
    %18 = arith.mulf %15, %17 : vector<1x128xf32>
    %19 = arith.addf %14, %18 : vector<1x128xf32>
    %20 = vector.extract_strided_slice %0 {offsets = [4, 0], sizes = [1, 128], strides = [1, 1]} : vector<6x128xf32> to vector<1x128xf32>
    %c4 = arith.constant 4 : index
    %21 = memref.load %arg2[%c4] : memref<6xf32, #tpu.memory_space<smem>>
    %22 = vector.broadcast %21 : f32 to vector<1x128xf32>
    %23 = arith.mulf %20, %22 : vector<1x128xf32>
    %24 = arith.addf %19, %23 : vector<1x128xf32>
    %25 = vector.extract_strided_slice %0 {offsets = [5, 0], sizes = [1, 128], strides = [1, 1]} : vector<6x128xf32> to vector<1x128xf32>
    %c5 = arith.constant 5 : index
    %26 = memref.load %arg2[%c5] : memref<6xf32, #tpu.memory_space<smem>>
    %27 = vector.broadcast %26 : f32 to vector<1x128xf32>
    %28 = arith.mulf %25, %27 : vector<1x128xf32>
    %29 = arith.addf %24, %28 : vector<1x128xf32>
    %c0_2 = arith.constant 0 : index
    %30 = memref.load %arg3[%c0_2] : memref<1xf32, #tpu.memory_space<smem>>
    %31 = vector.broadcast %30 : f32 to vector<1x128xf32>
    %32 = arith.addf %29, %31 : vector<1x128xf32>
    %c0_3 = arith.constant 0 : index
    %c0_4 = arith.constant 0 : index
    %33 = vector.load %arg4[%c0_3, %c0_4] : memref<1x128xf32, #tpu.memory_space<vmem>>, vector<1x128xf32>
    tpu.vector_store %arg4[%c0_3, %c0_4], %32 {strides = array<i32>} : memref<1x128xf32, #tpu.memory_space<vmem>>, vector<1x128xf32>,
    return
  }
  func.func @transform_0(%arg0: i32) -> (i32, i32) {
    %c0_i32 = arith.constant 0 : i32
    %c0_i32_0 = arith.constant 0 : i32
    return %c0_i32, %arg0 : i32, i32
  }
  func.func @transform_1(%arg0: i32) -> i32 {
    %c0_i32 = arith.constant 0 : i32
    %c0_i32_0 = arith.constant 0 : i32
    return %c0_i32 : i32
  }
  func.func @transform_2(%arg0: i32) -> i32 {
    %c0_i32 = arith.constant 0 : i32
    %c0_i32_0 = arith.constant 0 : i32
    return %c0_i32 : i32
  }
  func.func @transform_3(%arg0: i32) -> (i32, i32) {
    %c0_i32 = arith.constant 0 : i32
    %c0_i32_0 = arith.constant 0 : i32
    return %c0_i32, %arg0 : i32, i32
  }
}

</mosaic_0001>

<bundles_post_ra>
// kernel: tpu_custom_call.1
= control target key start
LH: loop header
LB: loop body
LE: loop exit
PB: predicated region body
PF: predicated region fallthrough
CT: control target
= control target key end

     0   :  { %9 = vsyncpa [#allocation4], 0  ;;  %s213_s0 = inlined_call_operand.hbm [shape: f32[6,128], index: 0, kind: input, shape index: {}]   ;;  %s214_s1 = inlined_call_operand.vmem [shape: f32[6], index: 1, kind: input, shape index: {}]   ;;  %s215_s2 = inlined_call_operand.<no memory space> [shape: f32[1], index: 2, kind: input, shape index: {}]   ;;  %s216_s3 = inlined_call_operand.hbm [shape: f32[1,128], index: 3, kind: output, shape index: {}]  }
   0x1   :  { %10 = vsyncpa [#allocation6], 0 }
   0x2   :  { %11 = vsyncpa [#allocation5], 0  ;;  %s17_s14 = sshll.u32 %s213_s0, 4  ;;  %s178_s15 = smov [#allocation3]   ;;  %s18_s14 = int_to_ptr.hbm [resolvable:$true] %s17_s14 }
   0x3   :  { %s19_s16 = sshll.u32 %s178_s15, 4  ;;  %s28_s19 = sshll.u32 %s214_s1, 4  ;;  %s20_s16 = int_to_ptr.vmem [resolvable:$true] %s19_s16  ;;  %s29_s19 = int_to_ptr.vmem [resolvable:$true] %s28_s19 }
   0x4   :  { %22 = dma.hbm_to_vmem [thread:$0]  %s18_s14, 128, %s20_s16, [#allocation4]  }
   0x5   :  { %s179_s20 = smov [#allocation7]  }
   0x6   :  { %31 = dma.vmem_to_smem %s29_s19, 16, %s179_s20, [#allocation6]  }
   0x7   :  { %172 = dma.done.wait [#allocation4], 128  }
   0x8   :  { %173 = vsyncadd [#allocation4], 4294967168 }
   0x9   :  { %174 = dma.done.wait [#allocation6], 16  }
   0xa   :  { %175 = vsyncadd [#allocation6], 4294967280 }
   0xb   :  { %42 = sfence }
   0xc   :  { %s44_s21 = sld [smem:[#allocation7]]  ;;  %v43_v0 = vld [vmem:[#allocation3] sm:$0x3f]  ;;  %v83_v22 = vstv %s215_s2  ;;  %s180_s27 = smov [#allocation8]  }
   0xd   :  { %s104_s22 = sld [smem:[#allocation7 + $0x1]]  ;;  %s91_s28 = sshll.u32 %s180_s27, 4  ;;  %s92_s28 = int_to_ptr.vmem [resolvable:$true] %s91_s28 }
   0xe   :  { %s105_s0 = sld [smem:[#allocation7 + $0x2]]  ;;  %s93_s4 = sshll.u32 %s216_s3, 4  ;;  %s94_s4 = int_to_ptr.hbm [resolvable:$true] %s93_s4 }
   0xf   :  { %s106_s23 = sld [smem:[#allocation7 + $0x3]] }
  0x10   :  { %s107_s24 = sld [smem:[#allocation7 + $0x4]] }
  0x11   :  { %s108_s25 = sld [smem:[#allocation7 + $0x5]] }
  0x12   :  { %v45_v1 = vstv %s44_s21 }
  0x13   :  { %v48_v2 = vstv %s104_s22  ;;  %v46_v3 = vmul.f32 %v45_v1, %v43_v0 }
  0x14   :  { %v49_v4 = vmul.f32 %v48_v2, %v43_v0  ;;  %v55_v5 = vstv %s105_s0 }
  0x15   :  { %v56_v6 = vmul.f32 %v55_v5, %v43_v0  ;;  %v62_v7 = vstv %s106_s23 }
  0x16   :  { %v51_v8 = vrot.slane %v49_v4, 1  ;;  %v63_v9 = vmul.f32 %v62_v7, %v43_v0  ;;  %v69_v10 = vstv %s107_s24 }
  0x17   :  { %v58_v11 = vrot.slane %v56_v6, 2  ;;  %v70_v12 = vmul.f32 %v69_v10, %v43_v0  ;;  %v76_v13 = vstv %s108_s25 }
  0x18   :  { %v53_v14 = vadd.f32 %v51_v8, %v46_v3  ;;  %v65_v15 = vrot.slane %v63_v9, 3  ;;  %v77_v16 = vmul.f32 %v76_v13, %v43_v0 }
  0x19   :  { %v72_v18 = vrot.slane %v70_v12, 4 }
  0x1a   :  { %v60_v17 = vadd.f32 %v58_v11, %v53_v14  ;;  %v79_v20 = vrot.slane %v77_v16, 5 }
  0x1c   :  { %v67_v19 = vadd.f32 %v65_v15, %v60_v17 }
  0x1e   :  { %v74_v21 = vadd.f32 %v72_v18, %v67_v19 }
  0x20   :  { %v81_v23 = vadd.f32 %v79_v20, %v74_v21 }
  0x22   :  { %v84_v24 = vadd.f32 %v83_v22, %v81_v23 }
  0x24   :  { %85 = vst [vmem:[#allocation8] sm:$0x1] %v84_v24 }
  0x25   :  { %96 = dma.vmem_to_hbm [thread:$0]  %s92_s28, 16, %s94_s4, [#allocation5]  }
  0x26   :  { %176 = dma.done.wait [#allocation5], 16  }
  0x27   :  { %177 = vsyncadd [#allocation5], 4294967280 }
  0x28   :  { %101 = vsyncpa [#allocation4], 1 }
  0x29   :  { %102 = vsyncpa [#allocation5], 1 }
  0x2a   :  { %103 = vsyncpa [#allocation6], 1 }

</bundles_post_ra>
